<compile_context>
chip_gen: v5e
topology: v5e:2x2
jax: 0.10.0
libtpu: 0.0.40
codegen_flags: <defaults>
</compile_context>

<pallas_src>
import math
import jax
import jax.numpy as jnp
from jax.experimental import pallas as pl
from jax.experimental.pallas import tpu as pltpu

_LANE = 128      # vreg lane width
_SUBLANE = 8     # f32 sublanes per vreg


def _round_up(n, m):
    return ((n + m - 1) // m) * m


def _leaky_relu(v, negative_slope=0.2):
    return jnp.where(v > 0, v, negative_slope * v)


def mlp4_kernel(x_ref,
                w1_ref, b1_ref,
                w2_ref, b2_ref,
                w3_ref, b3_ref,
                w4_ref, b4_ref,
                o_ref):
    # Four matmuls + LeakyReLU fused per batch tile.
    # Weights arrive as bf16; activations are cast to bf16 right before each dot
    # (MXU input) while accumulation / bias add / activation stay in f32.
    h = x_ref[...].astype(jnp.bfloat16)
    h = jnp.dot(h, w1_ref[...], preferred_element_type=jnp.float32) + b1_ref[...]
    h = _leaky_relu(h)
    h = jnp.dot(h.astype(jnp.bfloat16), w2_ref[...],
                preferred_element_type=jnp.float32) + b2_ref[...]
    h = _leaky_relu(h)
    h = jnp.dot(h.astype(jnp.bfloat16), w3_ref[...],
                preferred_element_type=jnp.float32) + b3_ref[...]
    h = _leaky_relu(h)
    out = jnp.dot(h.astype(jnp.bfloat16), w4_ref[...],
                  preferred_element_type=jnp.float32) + b4_ref[...]
    o_ref[...] = out.astype(o_ref.dtype)


def mlp4_forward(x, params, *, block_b=512):
    """x: (B, nin) float32. params: dict of (in, out) weights and (1, out) biases (f32)."""
    B, nin = x.shape
    nh = params["w1"].shape[1]
    nout = params["w4"].shape[1]

    # Lane-dense layout: pad feature dims to multiples of 128. Zero padding is
    # exact: padded weight columns/rows are zero, so padded hidden lanes stay 0
    # through matmul, bias add (padded bias = 0) and LeakyReLU.
    nin_p = _round_up(nin, _LANE)
    nh_p = _round_up(nh, _LANE)
    nout_p = _round_up(nout, _LANE)

    # Batch tile: multiple of 8 sublanes, big enough to amortize ~0.35 us/step
    # grid overhead, small enough to sit well under scoped VMEM even on v7x.
    tb = _round_up(min(block_b, _round_up(B, _SUBLANE)), _SUBLANE)
    Bp = _round_up(B, tb)

    xp = jnp.zeros((Bp, nin_p), x.dtype).at[:B, :nin].set(x)

    def pad_w(w, rp, cp):  # weights -> bf16 (halved VMEM/HBM footprint)
        return jnp.zeros((rp, cp), jnp.bfloat16).at[:w.shape[0], :w.shape[1]].set(
            w.astype(jnp.bfloat16))

    def pad_b(b, cp):      # biases stay f32 for the f32 bias-add path
        return jnp.zeros((1, cp), jnp.float32).at[:, :b.shape[1]].set(b)

    w1 = pad_w(params["w1"], nin_p, nh_p); b1 = pad_b(params["b1"], nh_p)
    w2 = pad_w(params["w2"], nh_p, nh_p);  b2 = pad_b(params["b2"], nh_p)
    w3 = pad_w(params["w3"], nh_p, nh_p);  b3 = pad_b(params["b3"], nh_p)
    w4 = pad_w(params["w4"], nh_p, nout_p); b4 = pad_b(params["b4"], nout_p)

    grid = (Bp // tb,)

    pinned = lambda i: (0, 0)  # same block every step -> weights stay resident in VMEM
    in_specs = [
        pl.BlockSpec((tb, nin_p), lambda i: (i, 0)),       # x tile streams over batch
        pl.BlockSpec((nin_p, nh_p), pinned), pl.BlockSpec((1, nh_p), pinned),
        pl.BlockSpec((nh_p, nh_p), pinned),  pl.BlockSpec((1, nh_p), pinned),
        pl.BlockSpec((nh_p, nh_p), pinned),  pl.BlockSpec((1, nh_p), pinned),
        pl.BlockSpec((nh_p, nout_p), pinned), pl.BlockSpec((1, nout_p), pinned),
    ]
    out_spec = pl.BlockSpec((tb, nout_p), lambda i: (i, 0))  # lane-dense output slab

    flops = 2 * Bp * (nin_p * nh_p + 2 * nh_p * nh_p + nh_p * nout_p)
    bytes_accessed = (
        xp.size * 4 + Bp * nout_p * 4
        + 2 * (w1.size + w2.size + w3.size + w4.size)
        + 4 * (b1.size + b2.size + b3.size + b4.size))

    out = pl.pallas_call(
        mlp4_kernel,
        out_shape=jax.ShapeDtypeStruct((Bp, nout_p), x.dtype),
        grid=grid,
        in_specs=in_specs,
        out_specs=out_spec,
        compiler_params=pltpu.CompilerParams(
            dimension_semantics=("parallel",)),   # megacore sharding on v7x
        cost_estimate=pl.CostEstimate(
            flops=flops, transcendentals=0, bytes_accessed=bytes_accessed),
    )(xp, w1, b1, w2, b2, w3, b3, w4, b4)

    return out[:B, :nout]


def init_mlp4_params(key, nin, nout, nh):
    """Matches torch.nn.Linear default init: U(-1/sqrt(fan_in), 1/sqrt(fan_in)).
    Weights stored transposed as (in, out); biases as (1, out)."""
    dims = [(nin, nh), (nh, nh), (nh, nh), (nh, nout)]
    params = {}
    for idx, (fan_in, fan_out) in enumerate(dims, start=1):
        key, kw, kb = jax.random.split(key, 3)
        bound = 1.0 / math.sqrt(fan_in)
        params[f"w{idx}"] = jax.random.uniform(
            kw, (fan_in, fan_out), jnp.float32, minval=-bound, maxval=bound)
        params[f"b{idx}"] = jax.random.uniform(
            kb, (1, fan_out), jnp.float32, minval=-bound, maxval=bound)
    return params


def mlp4_reference_f32(x, params):
    h = x
    for i in (1, 2, 3):
        h = h @ params[f"w{i}"] + params[f"b{i}"]
        h = jnp.where(h > 0, h, 0.2 * h)
    return h @ params["w4"] + params["b4"]


def mlp4_reference_bf16(x, params):
    """Mimics the kernel numerics: bf16 MXU inputs, f32 accumulate/elementwise."""
    h = x
    for i in (1, 2, 3):
        h = jnp.dot(h.astype(jnp.bfloat16), params[f"w{i}"].astype(jnp.bfloat16),
                    preferred_element_type=jnp.float32) + params[f"b{i}"]
        h = jnp.where(h > 0, h, 0.2 * h)
    return jnp.dot(h.astype(jnp.bfloat16), params["w4"].astype(jnp.bfloat16),
                   preferred_element_type=jnp.float32) + params["b4"]


if __name__ == "__main__":
    # Small shapes consistent with MLP4(nin, nout, nh)
    B, nin, nout, nh = 8, 16, 8, 32

    key = jax.random.PRNGKey(0)
    key, kx = jax.random.split(key)
    x = jax.random.normal(kx, (B, nin), jnp.float32)
    params = init_mlp4_params(key, nin, nout, nh)

    fwd = jax.jit(mlp4_forward)
    y = jax.block_until_ready(fwd(x, params))
    assert y.shape == (B, nout)

    # Tight check vs. a reference with matching bf16-MXU / f32-accumulate numerics.
    y_bf16 = mlp4_reference_bf16(x, params)
    assert jnp.allclose(y, y_bf16, atol=1e-3, rtol=1e-3), "mismatch vs bf16-matched ref"

    # Loose sanity check vs. full-f32 reference (bf16 inputs cost ~<1% rel error).
    y_f32 = mlp4_reference_f32(x, params)
    assert jnp.allclose(y, y_f32, atol=1e-1, rtol=1e-1), "mismatch vs f32 ref"

    print("KERNEL_OK")
</pallas_src>

<mosaic_0001>
module attributes {stable_mosaic.version = 11 : i64} {
  func.func @mlp4_kernel(%arg0: i32, %arg1: memref<8x128xf32, #tpu.memory_space<vmem>>, %arg2: memref<128x128xbf16, #tpu.memory_space<vmem>>, %arg3: memref<1x128xf32, #tpu.memory_space<vmem>>, %arg4: memref<128x128xbf16, #tpu.memory_space<vmem>>, %arg5: memref<1x128xf32, #tpu.memory_space<vmem>>, %arg6: memref<128x128xbf16, #tpu.memory_space<vmem>>, %arg7: memref<1x128xf32, #tpu.memory_space<vmem>>, %arg8: memref<128x128xbf16, #tpu.memory_space<vmem>>, %arg9: memref<1x128xf32, #tpu.memory_space<vmem>>, %arg10: memref<8x128xf32, #tpu.memory_space<vmem>>) attributes {dimension_semantics = [#tpu.dimension_semantics<parallel>], iteration_bounds = array<i64: 1>, scalar_prefetch = 0 : i64, scratch_operands = 0 : i64, tpu.core_type = #tpu.core_type<tc>, window_params = [{transform_indices = @transform_0, window_bounds = array<i64: 8, 128>}, {pipeline_mode = #tpu.pipeline_mode<synchronous>, transform_indices = @transform_1, window_bounds = array<i64: 128, 128>}, {pipeline_mode = #tpu.pipeline_mode<synchronous>, transform_indices = @transform_2, window_bounds = array<i64: 1, 128>}, {pipeline_mode = #tpu.pipeline_mode<synchronous>, transform_indices = @transform_3, window_bounds = array<i64: 128, 128>}, {pipeline_mode = #tpu.pipeline_mode<synchronous>, transform_indices = @transform_4, window_bounds = array<i64: 1, 128>}, {pipeline_mode = #tpu.pipeline_mode<synchronous>, transform_indices = @transform_5, window_bounds = array<i64: 128, 128>}, {pipeline_mode = #tpu.pipeline_mode<synchronous>, transform_indices = @transform_6, window_bounds = array<i64: 1, 128>}, {pipeline_mode = #tpu.pipeline_mode<synchronous>, transform_indices = @transform_7, window_bounds = array<i64: 128, 128>}, {pipeline_mode = #tpu.pipeline_mode<synchronous>, transform_indices = @transform_8, window_bounds = array<i64: 1, 128>}, {transform_indices = @transform_9, window_bounds = array<i64: 8, 128>}]} {
    %c0 = arith.constant 0 : index
    %c0_0 = arith.constant 0 : index
    %0 = vector.load %arg1[%c0, %c0_0] : memref<8x128xf32, #tpu.memory_space<vmem>>, vector<8x128xf32>
    %1 = arith.truncf %0 : vector<8x128xf32> to vector<8x128xbf16>
    %c0_1 = arith.constant 0 : index
    %c0_2 = arith.constant 0 : index
    %2 = vector.load %arg2[%c0_1, %c0_2] : memref<128x128xbf16, #tpu.memory_space<vmem>>, vector<128x128xbf16>
    %cst = arith.constant dense<0.000000e+00> : vector<8x128xf32>
    %3 = tpu.matmul %1, %2, %cst {dimension_numbers = #tpu.dot_dimension_numbers<[1], [0], [0], [1], [0, 0, 1, 1], [], []>} : vector<8x128xbf16>, vector<128x128xbf16>, vector<8x128xf32> -> vector<8x128xf32>
    %c0_3 = arith.constant 0 : index
    %c0_4 = arith.constant 0 : index
    %4 = vector.load %arg3[%c0_3, %c0_4] : memref<1x128xf32, #tpu.memory_space<vmem>>, vector<1x128xf32>
    %5 = vector.broadcast %4 : vector<1x128xf32> to vector<8x128xf32>
    %6 = arith.addf %3, %5 : vector<8x128xf32>
    %cst_5 = arith.constant 0.000000e+00 : f32
    %7 = vector.broadcast %cst_5 : f32 to vector<8x128xf32>
    %8 = arith.cmpf ogt, %6, %7 : vector<8x128xf32>
    %cst_6 = arith.constant 2.000000e-01 : f32
    %9 = vector.broadcast %cst_6 : f32 to vector<8x128xf32>
    %10 = arith.mulf %9, %6 : vector<8x128xf32>
    %11 = arith.select %8, %6, %10 : vector<8x128xi1>, vector<8x128xf32>
    %12 = arith.truncf %11 : vector<8x128xf32> to vector<8x128xbf16>
    %c0_7 = arith.constant 0 : index
    %c0_8 = arith.constant 0 : index
    %13 = vector.load %arg4[%c0_7, %c0_8] : memref<128x128xbf16, #tpu.memory_space<vmem>>, vector<128x128xbf16>
    %cst_9 = arith.constant dense<0.000000e+00> : vector<8x128xf32>
    %14 = tpu.matmul %12, %13, %cst_9 {dimension_numbers = #tpu.dot_dimension_numbers<[1], [0], [0], [1], [0, 0, 1, 1], [], []>} : vector<8x128xbf16>, vector<128x128xbf16>, vector<8x128xf32> -> vector<8x128xf32>
    %c0_10 = arith.constant 0 : index
    %c0_11 = arith.constant 0 : index
    %15 = vector.load %arg5[%c0_10, %c0_11] : memref<1x128xf32, #tpu.memory_space<vmem>>, vector<1x128xf32>
    %16 = vector.broadcast %15 : vector<1x128xf32> to vector<8x128xf32>
    %17 = arith.addf %14, %16 : vector<8x128xf32>
    %cst_12 = arith.constant 0.000000e+00 : f32
    %18 = vector.broadcast %cst_12 : f32 to vector<8x128xf32>
    %19 = arith.cmpf ogt, %17, %18 : vector<8x128xf32>
    %cst_13 = arith.constant 2.000000e-01 : f32
    %20 = vector.broadcast %cst_13 : f32 to vector<8x128xf32>
    %21 = arith.mulf %20, %17 : vector<8x128xf32>
    %22 = arith.select %19, %17, %21 : vector<8x128xi1>, vector<8x128xf32>
    %23 = arith.truncf %22 : vector<8x128xf32> to vector<8x128xbf16>
    %c0_14 = arith.constant 0 : index
    %c0_15 = arith.constant 0 : index
    %24 = vector.load %arg6[%c0_14, %c0_15] : memref<128x128xbf16, #tpu.memory_space<vmem>>, vector<128x128xbf16>
    %cst_16 = arith.constant dense<0.000000e+00> : vector<8x128xf32>
    %25 = tpu.matmul %23, %24, %cst_16 {dimension_numbers = #tpu.dot_dimension_numbers<[1], [0], [0], [1], [0, 0, 1, 1], [], []>} : vector<8x128xbf16>, vector<128x128xbf16>, vector<8x128xf32> -> vector<8x128xf32>
    %c0_17 = arith.constant 0 : index
    %c0_18 = arith.constant 0 : index
    %26 = vector.load %arg7[%c0_17, %c0_18] : memref<1x128xf32, #tpu.memory_space<vmem>>, vector<1x128xf32>
    %27 = vector.broadcast %26 : vector<1x128xf32> to vector<8x128xf32>
    %28 = arith.addf %25, %27 : vector<8x128xf32>
    %cst_19 = arith.constant 0.000000e+00 : f32
    %29 = vector.broadcast %cst_19 : f32 to vector<8x128xf32>
    %30 = arith.cmpf ogt, %28, %29 : vector<8x128xf32>
    %cst_20 = arith.constant 2.000000e-01 : f32
    %31 = vector.broadcast %cst_20 : f32 to vector<8x128xf32>
    %32 = arith.mulf %31, %28 : vector<8x128xf32>
    %33 = arith.select %30, %28, %32 : vector<8x128xi1>, vector<8x128xf32>
    %34 = arith.truncf %33 : vector<8x128xf32> to vector<8x128xbf16>
    %c0_21 = arith.constant 0 : index
    %c0_22 = arith.constant 0 : index
    %35 = vector.load %arg8[%c0_21, %c0_22] : memref<128x128xbf16, #tpu.memory_space<vmem>>, vector<128x128xbf16>
    %cst_23 = arith.constant dense<0.000000e+00> : vector<8x128xf32>
    %36 = tpu.matmul %34, %35, %cst_23 {dimension_numbers = #tpu.dot_dimension_numbers<[1], [0], [0], [1], [0, 0, 1, 1], [], []>} : vector<8x128xbf16>, vector<128x128xbf16>, vector<8x128xf32> -> vector<8x128xf32>
    %c0_24 = arith.constant 0 : index
    %c0_25 = arith.constant 0 : index
    %37 = vector.load %arg9[%c0_24, %c0_25] : memref<1x128xf32, #tpu.memory_space<vmem>>, vector<1x128xf32>
    %38 = vector.broadcast %37 : vector<1x128xf32> to vector<8x128xf32>
    %39 = arith.addf %36, %38 : vector<8x128xf32>
    %c0_26 = arith.constant 0 : index
    %c0_27 = arith.constant 0 : index
    %40 = vector.load %arg10[%c0_26, %c0_27] : memref<8x128xf32, #tpu.memory_space<vmem>>, vector<8x128xf32>
    tpu.vector_store %arg10[%c0_26, %c0_27], %39 {strides = array<i32>} : memref<8x128xf32, #tpu.memory_space<vmem>>, vector<8x128xf32>,
    return
  }
  func.func @transform_0(%arg0: i32) -> (i32, i32) {
    %c0_i32 = arith.constant 0 : i32
    %c0_i32_0 = arith.constant 0 : i32
    return %arg0, %c0_i32 : i32, i32
  }
  func.func @transform_1(%arg0: i32) -> (i32, i32) {
    %c0_i32 = arith.constant 0 : i32
    %c0_i32_0 = arith.constant 0 : i32
    %c0_i32_1 = arith.constant 0 : i32
    return %c0_i32, %c0_i32_0 : i32, i32
  }
  func.func @transform_2(%arg0: i32) -> (i32, i32) {
    %c0_i32 = arith.constant 0 : i32
    %c0_i32_0 = arith.constant 0 : i32
    %c0_i32_1 = arith.constant 0 : i32
    return %c0_i32, %c0_i32_0 : i32, i32
  }
  func.func @transform_3(%arg0: i32) -> (i32, i32) {
    %c0_i32 = arith.constant 0 : i32
    %c0_i32_0 = arith.constant 0 : i32
    %c0_i32_1 = arith.constant 0 : i32
    return %c0_i32, %c0_i32_0 : i32, i32
  }
  func.func @transform_4(%arg0: i32) -> (i32, i32) {
    %c0_i32 = arith.constant 0 : i32
    %c0_i32_0 = arith.constant 0 : i32
    %c0_i32_1 = arith.constant 0 : i32
    return %c0_i32, %c0_i32_0 : i32, i32
  }
  func.func @transform_5(%arg0: i32) -> (i32, i32) {
    %c0_i32 = arith.constant 0 : i32
    %c0_i32_0 = arith.constant 0 : i32
    %c0_i32_1 = arith.constant 0 : i32
    return %c0_i32, %c0_i32_0 : i32, i32
  }
  func.func @transform_6(%arg0: i32) -> (i32, i32) {
    %c0_i32 = arith.constant 0 : i32
    %c0_i32_0 = arith.constant 0 : i32
    %c0_i32_1 = arith.constant 0 : i32
    return %c0_i32, %c0_i32_0 : i32, i32
  }
  func.func @transform_7(%arg0: i32) -> (i32, i32) {
    %c0_i32 = arith.constant 0 : i32
    %c0_i32_0 = arith.constant 0 : i32
    %c0_i32_1 = arith.constant 0 : i32
    return %c0_i32, %c0_i32_0 : i32, i32
  }
  func.func @transform_8(%arg0: i32) -> (i32, i32) {
    %c0_i32 = arith.constant 0 : i32
    %c0_i32_0 = arith.constant 0 : i32
    %c0_i32_1 = arith.constant 0 : i32
    return %c0_i32, %c0_i32_0 : i32, i32
  }
  func.func @transform_9(%arg0: i32) -> (i32, i32) {
    %c0_i32 = arith.constant 0 : i32
    %c0_i32_0 = arith.constant 0 : i32
    return %arg0, %c0_i32 : i32, i32
  }
}

</mosaic_0001>

<bundles_post_ra>
// kernel: mlp4_forward.1
= control target key start
LH: loop header
LB: loop body
LE: loop exit
PB: predicated region body
PF: predicated region fallthrough
CT: control target
= control target key end

     0   :  { %s744_s0 = inlined_call_operand.vmem [shape: f32[8,128], index: 0, kind: input, shape index: {}]   ;;  %s745_s1 = inlined_call_operand.vmem [shape: bf16[128,128], index: 1, kind: input, shape index: {}]   ;;  %s746_s2 = inlined_call_operand.vmem [shape: f32[1,128], index: 2, kind: input, shape index: {}]   ;;  %s747_s3 = inlined_call_operand.vmem [shape: bf16[128,128], index: 3, kind: input, shape index: {}]   ;;  %s748_s4 = inlined_call_operand.vmem [shape: f32[1,128], index: 4, kind: input, shape index: {}]   ;;  %s749_s5 = inlined_call_operand.vmem [shape: bf16[128,128], index: 5, kind: input, shape index: {}]   ;;  %s750_s6 = inlined_call_operand.vmem [shape: f32[1,128], index: 6, kind: input, shape index: {}]   ;;  %s751_s7 = inlined_call_operand.vmem [shape: bf16[128,128], index: 7, kind: input, shape index: {}]   ;;  %s752_s8 = inlined_call_operand.vmem [shape: f32[1,128], index: 8, kind: input, shape index: {}]   ;;  %s753_s9 = inlined_call_operand.hbm [shape: f32[8,128], index: 9, kind: output, shape index: {}]  }
   0x1   :  { %v523_v0 = vld [vmem:[%s745_s1 + $0x38] sm:$0xff]  ;;  %v522_v1 = vld [vmem:[%s745_s1 + $0x30] sm:$0xff]  ;;  %v521_v3 = vld [vmem:[%s745_s1 + $0x28] sm:$0xff] }
   0x2   :  { %103 = vmatpush.bf16.msra.mxu0 %v523_v0  ;;  %v531_v2 = vld [vmem:[%s747_s3 + $0x38] sm:$0xff]  ;;  %v530_v4 = vld [vmem:[%s747_s3 + $0x30] sm:$0xff] }
   0x3   :  { %188 = vmatpush.bf16.msra.mxu1 %v531_v2 }
   0x6   :  { %104 = vmatpush.bf16.msra.mxu0 %v522_v1 }
   0x7   :  { %14 = vsyncpa [#allocation3], 0  ;;  %189 = vmatpush.bf16.msra.mxu1 %v530_v4  ;;  %v529_v5 = vld [vmem:[%s747_s3 + $0x28] sm:$0xff]  ;;  %v520_v6 = vld [vmem:[%s745_s1 + $0x20] sm:$0xff]  ;;  %s579_s11 = smov [#allocation2]   ;;  %s379_s14 = sshll.u32 %s753_s9, 4  ;;  %s380_s14 = int_to_ptr.hbm [resolvable:$true] %s379_s14 }
   0x8   :  { %v528_v7 = vld [vmem:[%s747_s3 + $0x20] sm:$0xff]  ;;  %v519_v8 = vld [vmem:[%s745_s1 + $0x18] sm:$0xff]  ;;  %v518_v10 = vld [vmem:[%s745_s1 + $0x10] sm:$0xff]  ;;  %s377_s12 = sshll.u32 %s579_s11, 4  ;;  %s378_s12 = int_to_ptr.vmem [resolvable:$true] %s377_s12 }
   0x9   :  { %v527_v9 = vld [vmem:[%s747_s3 + $0x18] sm:$0xff]  ;;  %v526_v11 = vld [vmem:[%s747_s3 + $0x10] sm:$0xff]  ;;  %v517_v12 = vld [vmem:[%s745_s1 + $0x8] sm:$0xff] }
   0xa   :  { %105 = vmatpush.bf16.msra.mxu0 %v521_v3  ;;  %v516_v13 = vld [vmem:[%s745_s1] sm:$0xff]  ;;  %v525_v16 = vld [vmem:[%s747_s3 + $0x8] sm:$0xff]  ;;  %v539_v18 = vld [vmem:[%s749_s5 + $0x38] sm:$0xff] }
   0xb   :  { %190 = vmatpush.bf16.msra.mxu1 %v529_v5  ;;  %v33_v14 = vld [vmem:[%s744_s0] sm:$0xff]  ;;  %273 = vmatpush.bf16.msra.mxu2 %v539_v18  ;;  %v538_v19 = vld [vmem:[%s749_s5 + $0x30] sm:$0xff]  ;;  %v537_v20 = vld [vmem:[%s749_s5 + $0x28] sm:$0xff] }
   0xc   :  { %v34_v15 = vpack.c.bf16 %v33_v14, %v33_v14  ;;  %v524_v17 = vld [vmem:[%s747_s3] sm:$0xff]  ;;  %v535_v22 = vld [vmem:[%s749_s5 + $0x18] sm:$0xff]  ;;  %v534_v23 = vld [vmem:[%s749_s5 + $0x10] sm:$0xff] }
   0xd   :  { %v536_v21 = vld [vmem:[%s749_s5 + $0x20] sm:$0xff]  ;;  %v533_v31 = vld [vmem:[%s749_s5 + $0x8] sm:$0xff]  ;;  %v547_v33 = vld [vmem:[%s751_s7 + $0x38] sm:$0xff] }
   0xe   :  { %106 = vmatpush.bf16.msra.mxu0 %v520_v6  ;;  %v549_v24 = vld [vmem:[%s746_s2] ss:$0 sm:$0xff]  ;;  %358 = vmatpush.bf16.msra.mxu3 %v547_v33  ;;  %v546_v34 = vld [vmem:[%s751_s7 + $0x30] sm:$0xff]  ;;  %v545_v35 = vld [vmem:[%s751_s7 + $0x28] sm:$0xff] }
   0xf   :  { %191 = vmatpush.bf16.msra.mxu1 %v528_v7  ;;  %274 = vmatpush.bf16.msra.mxu2 %v538_v19  ;;  %v532_v32 = vld [vmem:[%s749_s5] sm:$0xff]  ;;  %v543_v37 = vld [vmem:[%s751_s7 + $0x18] sm:$0xff]  ;;  %v542_v38 = vld [vmem:[%s751_s7 + $0x10] sm:$0xff] }
  0x10   :  { %v544_v36 = vld [vmem:[%s751_s7 + $0x20] sm:$0xff]  ;;  %v541_v46 = vld [vmem:[%s751_s7 + $0x8] sm:$0xff] }
  0x11   :  { %v550_v39 = vld [vmem:[%s748_s4] ss:$0 sm:$0xff] }
  0x12   :  { %107 = vmatpush.bf16.msra.mxu0 %v519_v8  ;;  %359 = vmatpush.bf16.msra.mxu3 %v546_v34  ;;  %v540_v47 = vld [vmem:[%s751_s7] sm:$0xff] }
  0x13   :  { %192 = vmatpush.bf16.msra.mxu1 %v527_v9  ;;  %275 = vmatpush.bf16.msra.mxu2 %v537_v20  ;;  %v551_v48 = vld [vmem:[%s750_s6] ss:$0 sm:$0xff] }
  0x14   :  { %v552_v55 = vld [vmem:[%s752_s8] ss:$0 sm:$0xff] }
  0x16   :  { %108 = vmatpush.bf16.msra.mxu0 %v518_v10  ;;  %360 = vmatpush.bf16.msra.mxu3 %v545_v35 }
  0x17   :  { %193 = vmatpush.bf16.msra.mxu1 %v526_v11  ;;  %276 = vmatpush.bf16.msra.mxu2 %v536_v21 }
  0x1a   :  { %109 = vmatpush.bf16.msra.mxu0 %v517_v12  ;;  %361 = vmatpush.bf16.msra.mxu3 %v544_v36 }
  0x1b   :  { %194 = vmatpush.bf16.msra.mxu1 %v525_v16  ;;  %277 = vmatpush.bf16.msra.mxu2 %v535_v22 }
  0x1e   :  { %110 = vmatpush.bf16.msra.mxu0 %v516_v13  ;;  %362 = vmatpush.bf16.msra.mxu3 %v543_v37 }
  0x1f   :  { %195 = vmatpush.bf16.msra.mxu1 %v524_v17  ;;  %278 = vmatpush.bf16.msra.mxu2 %v534_v23 }
  0x21   :  { %111 = vmatmul.bf16.vlgmr.msra.gmra.mxu0 %v34_v15 }
  0x22   :  { %363 = vmatpush.bf16.msra.mxu3 %v542_v38 }
  0x23   :  { %279 = vmatpush.bf16.msra.mxu2 %v533_v31 }
  0x26   :  { %364 = vmatpush.bf16.msra.mxu3 %v541_v46 }
  0x27   :  { %280 = vmatpush.bf16.msra.mxu2 %v532_v32 }
  0x2a   :  { %365 = vmatpush.bf16.msra.mxu3 %v540_v47 }
  0x9e   :  { %v112_v25 = vpop.f32.mrf.mxu0 }
  0x9f   :  { %v113_v26 = vadd.f32 %v549_v24, %v112_v25 }
  0xa1   :  { %v117_v27 = vmul.f32 0.2, %v113_v26  ;;  %vm116_vm0 = vcmp.gt.f32.partialorder %v113_v26, 0.0 }
  0xa3   :  { %v118_v28 = vsel %vm116_vm0, %v113_v26, %v117_v27 }
  0xa4   :  { %v119_v29 = vpack.c.bf16 %v118_v28, %v118_v28 }
  0xa6   :  { %v114_v30 = vpop.f32.mrf.mxu0  ;;  %196 = vmatmul.bf16.vlgmr.msra.gmra.mxu1 %v119_v29 }
 0x123   :  { %v197_v40 = vpop.f32.mrf.mxu1 }
 0x124   :  { %v198_v41 = vadd.f32 %v550_v39, %v197_v40 }
 0x126   :  { %v202_v42 = vmul.f32 0.2, %v198_v41  ;;  %vm201_vm1 = vcmp.gt.f32.partialorder %v198_v41, 0.0 }
 0x128   :  { %v203_v43 = vsel %vm201_vm1, %v198_v41, %v202_v42 }
 0x129   :  { %v204_v44 = vpack.c.bf16 %v203_v43, %v203_v43 }
 0x12b   :  { %v199_v45 = vpop.f32.mrf.mxu1  ;;  %281 = vmatmul.bf16.vlgmr.msra.gmra.mxu2 %v204_v44 }
 0x1ae   :  { %v282_v49 = vpop.f32.mrf.mxu2 }
 0x1af   :  { %v283_v50 = vadd.f32 %v551_v48, %v282_v49 }
 0x1b1   :  { %v287_v51 = vmul.f32 0.2, %v283_v50  ;;  %vm286_vm2 = vcmp.gt.f32.partialorder %v283_v50, 0.0 }
 0x1b3   :  { %v288_v52 = vsel %vm286_vm2, %v283_v50, %v287_v51 }
 0x1b4   :  { %v289_v53 = vpack.c.bf16 %v288_v52, %v288_v52 }
 0x1b6   :  { %v284_v54 = vpop.f32.mrf.mxu2  ;;  %366 = vmatmul.bf16.vlgmr.msra.gmra.mxu3 %v289_v53 }
 0x239   :  { %v367_v56 = vpop.f32.mrf.mxu3 }
 0x23a   :  { %v368_v57 = vadd.f32 %v552_v55, %v367_v56 }
 0x23c   :  { %371 = vst [vmem:[#allocation2] sm:$0xff] %v368_v57 }
 0x23d   :  { %382 = dma.vmem_to_hbm [thread:$0]  %s378_s12, 128, %s380_s14, [#allocation3]  }
 0x241   :  { %v369_v58 = vpop.f32.mrf.mxu3 }
 0x242   :  { %577 = dma.done.wait [#allocation3], 128  }
 0x243   :  { %578 = vsyncadd [#allocation3], 4294967168 }
 0x244   :  { %387 = vsyncpa [#allocation3], 1 }

</bundles_post_ra>
